<compile_context>
chip_gen: v5e
topology: v5e:2x2
jax: 0.10.0
libtpu: 0.0.40
codegen_flags: <defaults>
</compile_context>

<pallas_src>
import jax
import jax.numpy as jnp
from jax import lax
from jax.experimental import pallas as pl
from jax.experimental.pallas import tpu as pltpu


def attention_lstm_kernel(xp_ref, w_hh_ref, w_fc_ref, b_fc_ref,
                          out_ref, lstm_out_scratch):
    # xp_ref:           (T, Bb, 4H)  precomputed x@W_ih + (b_ih+b_hh), time-major
    # w_hh_ref:         (H, 4H)
    # w_fc_ref:         (H, O)
    # b_fc_ref:         (1, O)
    # out_ref:          (Bb, O)      log-probabilities for this batch block
    # lstm_out_scratch: (T, Bb, H)   per-step hidden states
    T, Bb, _ = xp_ref.shape
    H = w_hh_ref.shape[0]

    w_hh = w_hh_ref[...]  # hoisted out of the loop

    def step(t, carry):
        h, c = carry
        # Only the h->h matmul remains on the serial critical path.
        gates = xp_ref[t] + jnp.dot(h, w_hh, preferred_element_type=jnp.float32)
        # Full-block transcendentals: two full-vreg EUP passes over (Bb, 4H)
        # instead of four lane-misaligned partial passes.
        sg = jax.nn.sigmoid(gates)
        th = jnp.tanh(gates)
        i = sg[:, 0:H]
        f = sg[:, H:2 * H]
        g = th[:, 2 * H:3 * H]
        o = sg[:, 3 * H:4 * H]
        c_new = f * c + i * g
        h_new = o * jnp.tanh(c_new)
        lstm_out_scratch[t] = h_new
        return (h_new, c_new)

    h0 = jnp.zeros((Bb, H), jnp.float32)
    c0 = jnp.zeros((Bb, H), jnp.float32)
    # T is static -> fully unrolled so the scheduler sees across iterations.
    h_final, _ = lax.fori_loop(0, T, step, (h0, c0), unroll=True)

    outs = lstm_out_scratch[...]  # (T, Bb, H)

    # attention: attn[b, t] = <outs[t, b, :], h_final[b, :]>
    attn = jnp.sum(outs * h_final[None, :, :], axis=-1)  # (T, Bb)
    attn = attn.T                                        # (Bb, T)
    attn = attn - jnp.max(attn, axis=1, keepdims=True)
    e = jnp.exp(attn)
    soft = e / jnp.sum(e, axis=1, keepdims=True)         # softmax over T

    # new_hidden[b, h] = sum_t soft[b, t] * outs[t, b, h]
    new_hidden = jnp.sum(soft.T[:, :, None] * outs, axis=0)  # (Bb, H)

    # dropout(p=0.0) is identity -> skip
    logits = jnp.dot(new_hidden, w_fc_ref[...],
                     preferred_element_type=jnp.float32) + b_fc_ref[...]

    # LogSoftmax over dim 1 (PyTorch implicit dim for 2-D input)
    m = jnp.max(logits, axis=1, keepdims=True)
    z = logits - m
    lse = jnp.log(jnp.sum(jnp.exp(z), axis=1, keepdims=True))
    out_ref[...] = z - lse


@jax.jit
def attention_lstm_forward(x, w_ih, w_hh, b, w_fc, b_fc):
    B, T, _ = x.shape
    H = w_hh.shape[0]
    O = w_fc.shape[1]
    G = 4 * H

    # Hoisted full-sequence input projection: one big MXU matmul done by XLA,
    # produced directly in time-major layout (no separate HBM transpose of x).
    # The LSTM bias (b_ih + b_hh) is folded in here, so the serial recurrence
    # only does the h @ W_hh matmul per step.
    x_proj = jnp.einsum("bte,eg->tbg", x.astype(jnp.float32), w_ih,
                        preferred_element_type=jnp.float32) + b  # (T, B, 4H)

    # Batch is embarrassingly parallel: block it so large batches spread over
    # the grid (and across TensorCores on v7x). Demo-sized batches -> 1 block.
    block_b = 8 if (B % 8 == 0) else B
    grid = (B // block_b,)

    return pl.pallas_call(
        attention_lstm_kernel,
        out_shape=jax.ShapeDtypeStruct((B, O), jnp.float32),
        grid=grid,
        in_specs=[
            pl.BlockSpec((T, block_b, G), lambda i: (0, i, 0)),  # x_proj
            pl.BlockSpec((H, G), lambda i: (0, 0)),              # w_hh
            pl.BlockSpec((H, O), lambda i: (0, 0)),              # w_fc
            pl.BlockSpec((1, O), lambda i: (0, 0)),              # b_fc
        ],
        out_specs=pl.BlockSpec((block_b, O), lambda i: (i, 0)),
        scratch_shapes=[pltpu.VMEM((T, block_b, H), jnp.float32)],
        compiler_params=pltpu.CompilerParams(
            dimension_semantics=("parallel",)),
    )(x_proj, w_hh, w_fc, b_fc)


def reference_forward(x, w_ih, w_hh, b, w_fc, b_fc):
    """Pure-JAX reference mirroring the PyTorch forward pass."""
    B, T, _ = x.shape
    H = w_hh.shape[0]
    h = jnp.zeros((B, H), jnp.float32)
    c = jnp.zeros((B, H), jnp.float32)
    outs = []
    for t in range(T):
        gates = x[:, t, :] @ w_ih + h @ w_hh + b
        i = jax.nn.sigmoid(gates[:, 0:H])
        f = jax.nn.sigmoid(gates[:, H:2 * H])
        g = jnp.tanh(gates[:, 2 * H:3 * H])
        o = jax.nn.sigmoid(gates[:, 3 * H:4 * H])
        c = f * c + i * g
        h = o * jnp.tanh(c)
        outs.append(h)
    output = jnp.stack(outs, axis=1)                       # (B, T, H)
    attn = jnp.einsum("bth,bh->bt", output, h)
    soft = jax.nn.softmax(attn, axis=1)
    new_hidden = jnp.einsum("bth,bt->bh", output, soft)
    logits = new_hidden @ w_fc + b_fc
    return jax.nn.log_softmax(logits, axis=1)


def init_params(key, embedding_dim, hidden_dim, output_size):
    """Deterministic uniform(-1/sqrt(H), 1/sqrt(H)) init, like PyTorch."""
    k = 1.0 / jnp.sqrt(jnp.float32(hidden_dim))
    ks = jax.random.split(key, 6)
    w_ih = jax.random.uniform(ks[0], (embedding_dim, 4 * hidden_dim),
                              jnp.float32, -k, k)
    w_hh = jax.random.uniform(ks[1], (hidden_dim, 4 * hidden_dim),
                              jnp.float32, -k, k)
    b_ih = jax.random.uniform(ks[2], (1, 4 * hidden_dim), jnp.float32, -k, k)
    b_hh = jax.random.uniform(ks[3], (1, 4 * hidden_dim), jnp.float32, -k, k)
    b = b_ih + b_hh
    w_fc = jax.random.uniform(ks[4], (hidden_dim, output_size),
                              jnp.float32, -k, k)
    b_fc = jax.random.uniform(ks[5], (1, output_size), jnp.float32, -k, k)
    return w_ih, w_hh, b, w_fc, b_fc


if __name__ == "__main__":
    # Small shapes consistent with the module's forward:
    # x: (batch, seq_len, embedding_dim)
    B, T, E, H, O = 2, 8, 32, 32, 2

    key = jax.random.PRNGKey(0)
    kx, kp = jax.random.split(key)
    x = jax.random.normal(kx, (B, T, E), jnp.float32)
    w_ih, w_hh, b, w_fc, b_fc = init_params(kp, E, H, O)

    out = attention_lstm_forward(x, w_ih, w_hh, b, w_fc, b_fc)
    out = jax.block_until_ready(out)

    ref = reference_forward(x, w_ih, w_hh, b, w_fc, b_fc)
    assert out.shape == (B, O)
    assert jnp.allclose(out, ref, atol=1e-5, rtol=1e-5), (out, ref)

    print("KERNEL_OK")
</pallas_src>

<mosaic_0001>
module attributes {stable_mosaic.version = 11 : i64} {
  func.func @attention_lstm_kernel(%arg0: i32, %arg1: memref<8x2x128xf32, #tpu.memory_space<vmem>>, %arg2: memref<32x128xf32, #tpu.memory_space<vmem>>, %arg3: memref<32x2xf32, #tpu.memory_space<vmem>>, %arg4: memref<1x2xf32, #tpu.memory_space<vmem>>, %arg5: memref<2x2xf32, #tpu.memory_space<vmem>>, %arg6: memref<8x2x32xf32, #tpu.memory_space<vmem>>) attributes {dimension_semantics = [#tpu.dimension_semantics<parallel>], iteration_bounds = array<i64: 1>, scalar_prefetch = 0 : i64, scratch_operands = 1 : i64, tpu.core_type = #tpu.core_type<tc>, window_params = [{transform_indices = @transform_0, window_bounds = array<i64: 8, 2, 128>}, {pipeline_mode = #tpu.pipeline_mode<synchronous>, transform_indices = @transform_1, window_bounds = array<i64: 32, 128>}, {pipeline_mode = #tpu.pipeline_mode<synchronous>, transform_indices = @transform_2, window_bounds = array<i64: 32, 2>}, {pipeline_mode = #tpu.pipeline_mode<synchronous>, transform_indices = @transform_3, window_bounds = array<i64: 1, 2>}, {transform_indices = @transform_4, window_bounds = array<i64: 2, 2>}]} {
    %c0 = arith.constant 0 : index
    %c0_0 = arith.constant 0 : index
    %0 = vector.load %arg2[%c0, %c0_0] : memref<32x128xf32, #tpu.memory_space<vmem>>, vector<32x128xf32>
    %cst = arith.constant 0.000000e+00 : f32
    %1 = vector.broadcast %cst : f32 to vector<2x32xf32>
    %cst_1 = arith.constant 0.000000e+00 : f32
    %2 = vector.broadcast %cst_1 : f32 to vector<2x32xf32>
    %c0_i32 = arith.constant 0 : i32
    %3 = arith.index_cast %c0_i32 : i32 to index
    %c0_2 = arith.constant 0 : index
    %c0_3 = arith.constant 0 : index
    %4 = vector.load %arg1[%3, %c0_2, %c0_3] : memref<8x2x128xf32, #tpu.memory_space<vmem>>, vector<1x2x128xf32>
    %5 = vector.shape_cast %4 : vector<1x2x128xf32> to vector<2x128xf32>
    %cst_4 = arith.constant dense<0.000000e+00> : vector<2x128xf32>
    %6 = tpu.matmul %1, %0, %cst_4 {dimension_numbers = #tpu.dot_dimension_numbers<[1], [0], [0], [1], [0, 0, 1, 1], [], []>} : vector<2x32xf32>, vector<32x128xf32>, vector<2x128xf32> -> vector<2x128xf32>
    %7 = arith.addf %5, %6 : vector<2x128xf32>
    %8 = arith.negf %7 : vector<2x128xf32>
    %9 = math.exp %8 : vector<2x128xf32>
    %cst_5 = arith.constant 1.000000e+00 : f32
    %10 = vector.broadcast %cst_5 : f32 to vector<2x128xf32>
    %11 = arith.addf %10, %9 : vector<2x128xf32>
    %12 = arith.divf %10, %11 : vector<2x128xf32>
    %13 = math.tanh %7 : vector<2x128xf32>
    %14 = vector.extract_strided_slice %12 {offsets = [0, 0], sizes = [2, 32], strides = [1, 1]} : vector<2x128xf32> to vector<2x32xf32>
    %15 = vector.extract_strided_slice %12 {offsets = [0, 32], sizes = [2, 32], strides = [1, 1]} : vector<2x128xf32> to vector<2x32xf32>
    %16 = vector.extract_strided_slice %13 {offsets = [0, 64], sizes = [2, 32], strides = [1, 1]} : vector<2x128xf32> to vector<2x32xf32>
    %17 = vector.extract_strided_slice %12 {offsets = [0, 96], sizes = [2, 32], strides = [1, 1]} : vector<2x128xf32> to vector<2x32xf32>
    %18 = arith.mulf %15, %2 : vector<2x32xf32>
    %19 = arith.mulf %14, %16 : vector<2x32xf32>
    %20 = arith.addf %18, %19 : vector<2x32xf32>
    %21 = math.tanh %20 : vector<2x32xf32>
    %22 = arith.mulf %17, %21 : vector<2x32xf32>
    %23 = arith.index_cast %c0_i32 : i32 to index
    %c0_6 = arith.constant 0 : index
    %c0_7 = arith.constant 0 : index
    %24 = vector.load %arg6[%23, %c0_6, %c0_7] : memref<8x2x32xf32, #tpu.memory_space<vmem>>, vector<1x2x32xf32>
    %25 = vector.shape_cast %24 : vector<1x2x32xf32> to vector<2x32xf32>
    %26 = vector.shape_cast %22 : vector<2x32xf32> to vector<1x2x32xf32>
    tpu.vector_store %arg6[%23, %c0_6, %c0_7], %26 {strides = array<i32>} : memref<8x2x32xf32, #tpu.memory_space<vmem>>, vector<1x2x32xf32>,
    %c1_i32 = arith.constant 1 : i32
    %27 = arith.index_cast %c1_i32 : i32 to index
    %c0_8 = arith.constant 0 : index
    %c0_9 = arith.constant 0 : index
    %28 = vector.load %arg1[%27, %c0_8, %c0_9] : memref<8x2x128xf32, #tpu.memory_space<vmem>>, vector<1x2x128xf32>
    %29 = vector.shape_cast %28 : vector<1x2x128xf32> to vector<2x128xf32>
    %cst_10 = arith.constant dense<0.000000e+00> : vector<2x128xf32>
    %30 = tpu.matmul %22, %0, %cst_10 {dimension_numbers = #tpu.dot_dimension_numbers<[1], [0], [0], [1], [0, 0, 1, 1], [], []>} : vector<2x32xf32>, vector<32x128xf32>, vector<2x128xf32> -> vector<2x128xf32>
    %31 = arith.addf %29, %30 : vector<2x128xf32>
    %32 = arith.negf %31 : vector<2x128xf32>
    %33 = math.exp %32 : vector<2x128xf32>
    %cst_11 = arith.constant 1.000000e+00 : f32
    %34 = vector.broadcast %cst_11 : f32 to vector<2x128xf32>
    %35 = arith.addf %34, %33 : vector<2x128xf32>
    %36 = arith.divf %34, %35 : vector<2x128xf32>
    %37 = math.tanh %31 : vector<2x128xf32>
    %38 = vector.extract_strided_slice %36 {offsets = [0, 0], sizes = [2, 32], strides = [1, 1]} : vector<2x128xf32> to vector<2x32xf32>
    %39 = vector.extract_strided_slice %36 {offsets = [0, 32], sizes = [2, 32], strides = [1, 1]} : vector<2x128xf32> to vector<2x32xf32>
    %40 = vector.extract_strided_slice %37 {offsets = [0, 64], sizes = [2, 32], strides = [1, 1]} : vector<2x128xf32> to vector<2x32xf32>
    %41 = vector.extract_strided_slice %36 {offsets = [0, 96], sizes = [2, 32], strides = [1, 1]} : vector<2x128xf32> to vector<2x32xf32>
    %42 = arith.mulf %39, %20 : vector<2x32xf32>
    %43 = arith.mulf %38, %40 : vector<2x32xf32>
    %44 = arith.addf %42, %43 : vector<2x32xf32>
    %45 = math.tanh %44 : vector<2x32xf32>
    %46 = arith.mulf %41, %45 : vector<2x32xf32>
    %47 = arith.index_cast %c1_i32 : i32 to index
    %c0_12 = arith.constant 0 : index
    %c0_13 = arith.constant 0 : index
    %48 = vector.load %arg6[%47, %c0_12, %c0_13] : memref<8x2x32xf32, #tpu.memory_space<vmem>>, vector<1x2x32xf32>
    %49 = vector.shape_cast %48 : vector<1x2x32xf32> to vector<2x32xf32>
    %50 = vector.shape_cast %46 : vector<2x32xf32> to vector<1x2x32xf32>
    tpu.vector_store %arg6[%47, %c0_12, %c0_13], %50 {strides = array<i32>} : memref<8x2x32xf32, #tpu.memory_space<vmem>>, vector<1x2x32xf32>,
    %c2_i32 = arith.constant 2 : i32
    %51 = arith.index_cast %c2_i32 : i32 to index
    %c0_14 = arith.constant 0 : index
    %c0_15 = arith.constant 0 : index
    %52 = vector.load %arg1[%51, %c0_14, %c0_15] : memref<8x2x128xf32, #tpu.memory_space<vmem>>, vector<1x2x128xf32>
    %53 = vector.shape_cast %52 : vector<1x2x128xf32> to vector<2x128xf32>
    %cst_16 = arith.constant dense<0.000000e+00> : vector<2x128xf32>
    %54 = tpu.matmul %46, %0, %cst_16 {dimension_numbers = #tpu.dot_dimension_numbers<[1], [0], [0], [1], [0, 0, 1, 1], [], []>} : vector<2x32xf32>, vector<32x128xf32>, vector<2x128xf32> -> vector<2x128xf32>
    %55 = arith.addf %53, %54 : vector<2x128xf32>
    %56 = arith.negf %55 : vector<2x128xf32>
    %57 = math.exp %56 : vector<2x128xf32>
    %cst_17 = arith.constant 1.000000e+00 : f32
    %58 = vector.broadcast %cst_17 : f32 to vector<2x128xf32>
    %59 = arith.addf %58, %57 : vector<2x128xf32>
    %60 = arith.divf %58, %59 : vector<2x128xf32>
    %61 = math.tanh %55 : vector<2x128xf32>
    %62 = vector.extract_strided_slice %60 {offsets = [0, 0], sizes = [2, 32], strides = [1, 1]} : vector<2x128xf32> to vector<2x32xf32>
    %63 = vector.extract_strided_slice %60 {offsets = [0, 32], sizes = [2, 32], strides = [1, 1]} : vector<2x128xf32> to vector<2x32xf32>
    %64 = vector.extract_strided_slice %61 {offsets = [0, 64], sizes = [2, 32], strides = [1, 1]} : vector<2x128xf32> to vector<2x32xf32>
    %65 = vector.extract_strided_slice %60 {offsets = [0, 96], sizes = [2, 32], strides = [1, 1]} : vector<2x128xf32> to vector<2x32xf32>
    %66 = arith.mulf %63, %44 : vector<2x32xf32>
    %67 = arith.mulf %62, %64 : vector<2x32xf32>
    %68 = arith.addf %66, %67 : vector<2x32xf32>
    %69 = math.tanh %68 : vector<2x32xf32>
    %70 = arith.mulf %65, %69 : vector<2x32xf32>
    %71 = arith.index_cast %c2_i32 : i32 to index
    %c0_18 = arith.constant 0 : index
    %c0_19 = arith.constant 0 : index
    %72 = vector.load %arg6[%71, %c0_18, %c0_19] : memref<8x2x32xf32, #tpu.memory_space<vmem>>, vector<1x2x32xf32>
    %73 = vector.shape_cast %72 : vector<1x2x32xf32> to vector<2x32xf32>
    %74 = vector.shape_cast %70 : vector<2x32xf32> to vector<1x2x32xf32>
    tpu.vector_store %arg6[%71, %c0_18, %c0_19], %74 {strides = array<i32>} : memref<8x2x32xf32, #tpu.memory_space<vmem>>, vector<1x2x32xf32>,
    %c3_i32 = arith.constant 3 : i32
    %75 = arith.index_cast %c3_i32 : i32 to index
    %c0_20 = arith.constant 0 : index
    %c0_21 = arith.constant 0 : index
    %76 = vector.load %arg1[%75, %c0_20, %c0_21] : memref<8x2x128xf32, #tpu.memory_space<vmem>>, vector<1x2x128xf32>
    %77 = vector.shape_cast %76 : vector<1x2x128xf32> to vector<2x128xf32>
    %cst_22 = arith.constant dense<0.000000e+00> : vector<2x128xf32>
    %78 = tpu.matmul %70, %0, %cst_22 {dimension_numbers = #tpu.dot_dimension_numbers<[1], [0], [0], [1], [0, 0, 1, 1], [], []>} : vector<2x32xf32>, vector<32x128xf32>, vector<2x128xf32> -> vector<2x128xf32>
    %79 = arith.addf %77, %78 : vector<2x128xf32>
    %80 = arith.negf %79 : vector<2x128xf32>
    %81 = math.exp %80 : vector<2x128xf32>
    %cst_23 = arith.constant 1.000000e+00 : f32
    %82 = vector.broadcast %cst_23 : f32 to vector<2x128xf32>
    %83 = arith.addf %82, %81 : vector<2x128xf32>
    %84 = arith.divf %82, %83 : vector<2x128xf32>
    %85 = math.tanh %79 : vector<2x128xf32>
    %86 = vector.extract_strided_slice %84 {offsets = [0, 0], sizes = [2, 32], strides = [1, 1]} : vector<2x128xf32> to vector<2x32xf32>
    %87 = vector.extract_strided_slice %84 {offsets = [0, 32], sizes = [2, 32], strides = [1, 1]} : vector<2x128xf32> to vector<2x32xf32>
    %88 = vector.extract_strided_slice %85 {offsets = [0, 64], sizes = [2, 32], strides = [1, 1]} : vector<2x128xf32> to vector<2x32xf32>
    %89 = vector.extract_strided_slice %84 {offsets = [0, 96], sizes = [2, 32], strides = [1, 1]} : vector<2x128xf32> to vector<2x32xf32>
    %90 = arith.mulf %87, %68 : vector<2x32xf32>
    %91 = arith.mulf %86, %88 : vector<2x32xf32>
    %92 = arith.addf %90, %91 : vector<2x32xf32>
    %93 = math.tanh %92 : vector<2x32xf32>
    %94 = arith.mulf %89, %93 : vector<2x32xf32>
    %95 = arith.index_cast %c3_i32 : i32 to index
    %c0_24 = arith.constant 0 : index
    %c0_25 = arith.constant 0 : index
    %96 = vector.load %arg6[%95, %c0_24, %c0_25] : memref<8x2x32xf32, #tpu.memory_space<vmem>>, vector<1x2x32xf32>
    %97 = vector.shape_cast %96 : vector<1x2x32xf32> to vector<2x32xf32>
    %98 = vector.shape_cast %94 : vector<2x32xf32> to vector<1x2x32xf32>
    tpu.vector_store %arg6[%95, %c0_24, %c0_25], %98 {strides = array<i32>} : memref<8x2x32xf32, #tpu.memory_space<vmem>>, vector<1x2x32xf32>,
    %c4_i32 = arith.constant 4 : i32
    %99 = arith.index_cast %c4_i32 : i32 to index
    %c0_26 = arith.constant 0 : index
    %c0_27 = arith.constant 0 : index
    %100 = vector.load %arg1[%99, %c0_26, %c0_27] : memref<8x2x128xf32, #tpu.memory_space<vmem>>, vector<1x2x128xf32>
    %101 = vector.shape_cast %100 : vector<1x2x128xf32> to vector<2x128xf32>
    %cst_28 = arith.constant dense<0.000000e+00> : vector<2x128xf32>
    %102 = tpu.matmul %94, %0, %cst_28 {dimension_numbers = #tpu.dot_dimension_numbers<[1], [0], [0], [1], [0, 0, 1, 1], [], []>} : vector<2x32xf32>, vector<32x128xf32>, vector<2x128xf32> -> vector<2x128xf32>
    %103 = arith.addf %101, %102 : vector<2x128xf32>
    %104 = arith.negf %103 : vector<2x128xf32>
    %105 = math.exp %104 : vector<2x128xf32>
    %cst_29 = arith.constant 1.000000e+00 : f32
    %106 = vector.broadcast %cst_29 : f32 to vector<2x128xf32>
    %107 = arith.addf %106, %105 : vector<2x128xf32>
    %108 = arith.divf %106, %107 : vector<2x128xf32>
    %109 = math.tanh %103 : vector<2x128xf32>
    %110 = vector.extract_strided_slice %108 {offsets = [0, 0], sizes = [2, 32], strides = [1, 1]} : vector<2x128xf32> to vector<2x32xf32>
    %111 = vector.extract_strided_slice %108 {offsets = [0, 32], sizes = [2, 32], strides = [1, 1]} : vector<2x128xf32> to vector<2x32xf32>
    %112 = vector.extract_strided_slice %109 {offsets = [0, 64], sizes = [2, 32], strides = [1, 1]} : vector<2x128xf32> to vector<2x32xf32>
    %113 = vector.extract_strided_slice %108 {offsets = [0, 96], sizes = [2, 32], strides = [1, 1]} : vector<2x128xf32> to vector<2x32xf32>
    %114 = arith.mulf %111, %92 : vector<2x32xf32>
    %115 = arith.mulf %110, %112 : vector<2x32xf32>
    %116 = arith.addf %114, %115 : vector<2x32xf32>
    %117 = math.tanh %116 : vector<2x32xf32>
    %118 = arith.mulf %113, %117 : vector<2x32xf32>
    %119 = arith.index_cast %c4_i32 : i32 to index
    %c0_30 = arith.constant 0 : index
    %c0_31 = arith.constant 0 : index
    %120 = vector.load %arg6[%119, %c0_30, %c0_31] : memref<8x2x32xf32, #tpu.memory_space<vmem>>, vector<1x2x32xf32>
    %121 = vector.shape_cast %120 : vector<1x2x32xf32> to vector<2x32xf32>
    %122 = vector.shape_cast %118 : vector<2x32xf32> to vector<1x2x32xf32>
    tpu.vector_store %arg6[%119, %c0_30, %c0_31], %122 {strides = array<i32>} : memref<8x2x32xf32, #tpu.memory_space<vmem>>, vector<1x2x32xf32>,
    %c5_i32 = arith.constant 5 : i32
    %123 = arith.index_cast %c5_i32 : i32 to index
    %c0_32 = arith.constant 0 : index
    %c0_33 = arith.constant 0 : index
    %124 = vector.load %arg1[%123, %c0_32, %c0_33] : memref<8x2x128xf32, #tpu.memory_space<vmem>>, vector<1x2x128xf32>
    %125 = vector.shape_cast %124 : vector<1x2x128xf32> to vector<2x128xf32>
    %cst_34 = arith.constant dense<0.000000e+00> : vector<2x128xf32>
    %126 = tpu.matmul %118, %0, %cst_34 {dimension_numbers = #tpu.dot_dimension_numbers<[1], [0], [0], [1], [0, 0, 1, 1], [], []>} : vector<2x32xf32>, vector<32x128xf32>, vector<2x128xf32> -> vector<2x128xf32>
    %127 = arith.addf %125, %126 : vector<2x128xf32>
    %128 = arith.negf %127 : vector<2x128xf32>
    %129 = math.exp %128 : vector<2x128xf32>
    %cst_35 = arith.constant 1.000000e+00 : f32
    %130 = vector.broadcast %cst_35 : f32 to vector<2x128xf32>
    %131 = arith.addf %130, %129 : vector<2x128xf32>
    %132 = arith.divf %130, %131 : vector<2x128xf32>
    %133 = math.tanh %127 : vector<2x128xf32>
    %134 = vector.extract_strided_slice %132 {offsets = [0, 0], sizes = [2, 32], strides = [1, 1]} : vector<2x128xf32> to vector<2x32xf32>
    %135 = vector.extract_strided_slice %132 {offsets = [0, 32], sizes = [2, 32], strides = [1, 1]} : vector<2x128xf32> to vector<2x32xf32>
    %136 = vector.extract_strided_slice %133 {offsets = [0, 64], sizes = [2, 32], strides = [1, 1]} : vector<2x128xf32> to vector<2x32xf32>
    %137 = vector.extract_strided_slice %132 {offsets = [0, 96], sizes = [2, 32], strides = [1, 1]} : vector<2x128xf32> to vector<2x32xf32>
    %138 = arith.mulf %135, %116 : vector<2x32xf32>
    %139 = arith.mulf %134, %136 : vector<2x32xf32>
    %140 = arith.addf %138, %139 : vector<2x32xf32>
    %141 = math.tanh %140 : vector<2x32xf32>
    %142 = arith.mulf %137, %141 : vector<2x32xf32>
    %143 = arith.index_cast %c5_i32 : i32 to index
    %c0_36 = arith.constant 0 : index
    %c0_37 = arith.constant 0 : index
    %144 = vector.load %arg6[%143, %c0_36, %c0_37] : memref<8x2x32xf32, #tpu.memory_space<vmem>>, vector<1x2x32xf32>
    %145 = vector.shape_cast %144 : vector<1x2x32xf32> to vector<2x32xf32>
    %146 = vector.shape_cast %142 : vector<2x32xf32> to vector<1x2x32xf32>
    tpu.vector_store %arg6[%143, %c0_36, %c0_37], %146 {strides = array<i32>} : memref<8x2x32xf32, #tpu.memory_space<vmem>>, vector<1x2x32xf32>,
    %c6_i32 = arith.constant 6 : i32
    %147 = arith.index_cast %c6_i32 : i32 to index
    %c0_38 = arith.constant 0 : index
    %c0_39 = arith.constant 0 : index
    %148 = vector.load %arg1[%147, %c0_38, %c0_39] : memref<8x2x128xf32, #tpu.memory_space<vmem>>, vector<1x2x128xf32>
    %149 = vector.shape_cast %148 : vector<1x2x128xf32> to vector<2x128xf32>
    %cst_40 = arith.constant dense<0.000000e+00> : vector<2x128xf32>
    %150 = tpu.matmul %142, %0, %cst_40 {dimension_numbers = #tpu.dot_dimension_numbers<[1], [0], [0], [1], [0, 0, 1, 1], [], []>} : vector<2x32xf32>, vector<32x128xf32>, vector<2x128xf32> -> vector<2x128xf32>
    %151 = arith.addf %149, %150 : vector<2x128xf32>
    %152 = arith.negf %151 : vector<2x128xf32>
    %153 = math.exp %152 : vector<2x128xf32>
    %cst_41 = arith.constant 1.000000e+00 : f32
    %154 = vector.broadcast %cst_41 : f32 to vector<2x128xf32>
    %155 = arith.addf %154, %153 : vector<2x128xf32>
    %156 = arith.divf %154, %155 : vector<2x128xf32>
    %157 = math.tanh %151 : vector<2x128xf32>
    %158 = vector.extract_strided_slice %156 {offsets = [0, 0], sizes = [2, 32], strides = [1, 1]} : vector<2x128xf32> to vector<2x32xf32>
    %159 = vector.extract_strided_slice %156 {offsets = [0, 32], sizes = [2, 32], strides = [1, 1]} : vector<2x128xf32> to vector<2x32xf32>
    %160 = vector.extract_strided_slice %157 {offsets = [0, 64], sizes = [2, 32], strides = [1, 1]} : vector<2x128xf32> to vector<2x32xf32>
    %161 = vector.extract_strided_slice %156 {offsets = [0, 96], sizes = [2, 32], strides = [1, 1]} : vector<2x128xf32> to vector<2x32xf32>
    %162 = arith.mulf %159, %140 : vector<2x32xf32>
    %163 = arith.mulf %158, %160 : vector<2x32xf32>
    %164 = arith.addf %162, %163 : vector<2x32xf32>
    %165 = math.tanh %164 : vector<2x32xf32>
    %166 = arith.mulf %161, %165 : vector<2x32xf32>
    %167 = arith.index_cast %c6_i32 : i32 to index
    %c0_42 = arith.constant 0 : index
    %c0_43 = arith.constant 0 : index
    %168 = vector.load %arg6[%167, %c0_42, %c0_43] : memref<8x2x32xf32, #tpu.memory_space<vmem>>, vector<1x2x32xf32>
    %169 = vector.shape_cast %168 : vector<1x2x32xf32> to vector<2x32xf32>
    %170 = vector.shape_cast %166 : vector<2x32xf32> to vector<1x2x32xf32>
    tpu.vector_store %arg6[%167, %c0_42, %c0_43], %170 {strides = array<i32>} : memref<8x2x32xf32, #tpu.memory_space<vmem>>, vector<1x2x32xf32>,
    %c7_i32 = arith.constant 7 : i32
    %171 = arith.index_cast %c7_i32 : i32 to index
    %c0_44 = arith.constant 0 : index
    %c0_45 = arith.constant 0 : index
    %172 = vector.load %arg1[%171, %c0_44, %c0_45] : memref<8x2x128xf32, #tpu.memory_space<vmem>>, vector<1x2x128xf32>
    %173 = vector.shape_cast %172 : vector<1x2x128xf32> to vector<2x128xf32>
    %cst_46 = arith.constant dense<0.000000e+00> : vector<2x128xf32>
    %174 = tpu.matmul %166, %0, %cst_46 {dimension_numbers = #tpu.dot_dimension_numbers<[1], [0], [0], [1], [0, 0, 1, 1], [], []>} : vector<2x32xf32>, vector<32x128xf32>, vector<2x128xf32> -> vector<2x128xf32>
    %175 = arith.addf %173, %174 : vector<2x128xf32>
    %176 = arith.negf %175 : vector<2x128xf32>
    %177 = math.exp %176 : vector<2x128xf32>
    %cst_47 = arith.constant 1.000000e+00 : f32
    %178 = vector.broadcast %cst_47 : f32 to vector<2x128xf32>
    %179 = arith.addf %178, %177 : vector<2x128xf32>
    %180 = arith.divf %178, %179 : vector<2x128xf32>
    %181 = math.tanh %175 : vector<2x128xf32>
    %182 = vector.extract_strided_slice %180 {offsets = [0, 0], sizes = [2, 32], strides = [1, 1]} : vector<2x128xf32> to vector<2x32xf32>
    %183 = vector.extract_strided_slice %180 {offsets = [0, 32], sizes = [2, 32], strides = [1, 1]} : vector<2x128xf32> to vector<2x32xf32>
    %184 = vector.extract_strided_slice %181 {offsets = [0, 64], sizes = [2, 32], strides = [1, 1]} : vector<2x128xf32> to vector<2x32xf32>
    %185 = vector.extract_strided_slice %180 {offsets = [0, 96], sizes = [2, 32], strides = [1, 1]} : vector<2x128xf32> to vector<2x32xf32>
    %186 = arith.mulf %183, %164 : vector<2x32xf32>
    %187 = arith.mulf %182, %184 : vector<2x32xf32>
    %188 = arith.addf %186, %187 : vector<2x32xf32>
    %189 = math.tanh %188 : vector<2x32xf32>
    %190 = arith.mulf %185, %189 : vector<2x32xf32>
    %191 = arith.index_cast %c7_i32 : i32 to index
    %c0_48 = arith.constant 0 : index
    %c0_49 = arith.constant 0 : index
    %192 = vector.load %arg6[%191, %c0_48, %c0_49] : memref<8x2x32xf32, #tpu.memory_space<vmem>>, vector<1x2x32xf32>
    %193 = vector.shape_cast %192 : vector<1x2x32xf32> to vector<2x32xf32>
    %194 = vector.shape_cast %190 : vector<2x32xf32> to vector<1x2x32xf32>
    tpu.vector_store %arg6[%191, %c0_48, %c0_49], %194 {strides = array<i32>} : memref<8x2x32xf32, #tpu.memory_space<vmem>>, vector<1x2x32xf32>,
    %c8_i32 = arith.constant 8 : i32
    %c0_50 = arith.constant 0 : index
    %c0_51 = arith.constant 0 : index
    %c0_52 = arith.constant 0 : index
    %195 = vector.load %arg6[%c0_50, %c0_51, %c0_52] : memref<8x2x32xf32, #tpu.memory_space<vmem>>, vector<8x2x32xf32>
    %196 = vector.shape_cast %190 : vector<2x32xf32> to vector<1x2x32xf32>
    %197 = vector.broadcast %196 : vector<1x2x32xf32> to vector<8x2x32xf32>
    %198 = arith.mulf %195, %197 : vector<8x2x32xf32>
    %cst_53 = arith.constant dense<0.000000e+00> : vector<8x2xf32>
    %199 = vector.multi_reduction <add>, %198, %cst_53 [2] : vector<8x2x32xf32> to vector<8x2xf32>
    %200 = tpu.transpose %199, [1, 0] : vector<8x2xf32> -> vector<2x8xf32>
    %cst_54 = arith.constant dense<0xFF800000> : vector<2xf32>
    %201 = vector.multi_reduction <maximumf>, %200, %cst_54 [1] : vector<2x8xf32> to vector<2xf32>
    %202 = vector.shape_cast %201 : vector<2xf32> to vector<2x1xf32>
    %203 = vector.broadcast %202 : vector<2x1xf32> to vector<2x8xf32>
    %204 = arith.subf %200, %203 : vector<2x8xf32>
    %205 = math.exp %204 : vector<2x8xf32>
    %cst_55 = arith.constant dense<0.000000e+00> : vector<2xf32>
    %206 = vector.multi_reduction <add>, %205, %cst_55 [1] : vector<2x8xf32> to vector<2xf32>
    %207 = vector.shape_cast %206 : vector<2xf32> to vector<2x1xf32>
    %208 = vector.broadcast %207 : vector<2x1xf32> to vector<2x8xf32>
    %209 = arith.divf %205, %208 : vector<2x8xf32>
    %210 = tpu.transpose %209, [1, 0] : vector<2x8xf32> -> vector<8x2xf32>
    %211 = vector.shape_cast %210 : vector<8x2xf32> to vector<8x2x1xf32>
    %212 = vector.broadcast %211 : vector<8x2x1xf32> to vector<8x2x32xf32>
    %213 = arith.mulf %212, %195 : vector<8x2x32xf32>
    %cst_56 = arith.constant dense<0.000000e+00> : vector<2x32xf32>
    %214 = vector.multi_reduction <add>, %213, %cst_56 [0] : vector<8x2x32xf32> to vector<2x32xf32>
    %c0_57 = arith.constant 0 : index
    %c0_58 = arith.constant 0 : index
    %215 = vector.load %arg3[%c0_57, %c0_58] : memref<32x2xf32, #tpu.memory_space<vmem>>, vector<32x2xf32>
    %cst_59 = arith.constant dense<0.000000e+00> : vector<2x2xf32>
    %216 = tpu.matmul %214, %215, %cst_59 {dimension_numbers = #tpu.dot_dimension_numbers<[1], [0], [0], [1], [0, 0, 1, 1], [], []>} : vector<2x32xf32>, vector<32x2xf32>, vector<2x2xf32> -> vector<2x2xf32>
    %c0_60 = arith.constant 0 : index
    %c0_61 = arith.constant 0 : index
    %217 = vector.load %arg4[%c0_60, %c0_61] : memref<1x2xf32, #tpu.memory_space<vmem>>, vector<1x2xf32>
    %218 = vector.broadcast %217 : vector<1x2xf32> to vector<2x2xf32>
    %219 = arith.addf %216, %218 : vector<2x2xf32>
    %cst_62 = arith.constant dense<0xFF800000> : vector<2xf32>
    %220 = vector.multi_reduction <maximumf>, %219, %cst_62 [1] : vector<2x2xf32> to vector<2xf32>
    %221 = vector.shape_cast %220 : vector<2xf32> to vector<2x1xf32>
    %222 = vector.broadcast %221 : vector<2x1xf32> to vector<2x2xf32>
    %223 = arith.subf %219, %222 : vector<2x2xf32>
    %224 = math.exp %223 : vector<2x2xf32>
    %cst_63 = arith.constant dense<0.000000e+00> : vector<2xf32>
    %225 = vector.multi_reduction <add>, %224, %cst_63 [1] : vector<2x2xf32> to vector<2xf32>
    %226 = vector.shape_cast %225 : vector<2xf32> to vector<2x1xf32>
    %227 = math.log %226 : vector<2x1xf32>
    %228 = vector.broadcast %227 : vector<2x1xf32> to vector<2x2xf32>
    %229 = arith.subf %223, %228 : vector<2x2xf32>
    %c0_64 = arith.constant 0 : index
    %c0_65 = arith.constant 0 : index
    %230 = vector.load %arg5[%c0_64, %c0_65] : memref<2x2xf32, #tpu.memory_space<vmem>>, vector<2x2xf32>
    tpu.vector_store %arg5[%c0_64, %c0_65], %229 {strides = array<i32>} : memref<2x2xf32, #tpu.memory_space<vmem>>, vector<2x2xf32>,
    return
  }
  func.func @transform_0(%arg0: i32) -> (i32, i32, i32) {
    %c0_i32 = arith.constant 0 : i32
    %c0_i32_0 = arith.constant 0 : i32
    %c0_i32_1 = arith.constant 0 : i32
    return %c0_i32, %arg0, %c0_i32_0 : i32, i32, i32
  }
  func.func @transform_1(%arg0: i32) -> (i32, i32) {
    %c0_i32 = arith.constant 0 : i32
    %c0_i32_0 = arith.constant 0 : i32
    %c0_i32_1 = arith.constant 0 : i32
    return %c0_i32, %c0_i32_0 : i32, i32
  }
  func.func @transform_2(%arg0: i32) -> (i32, i32) {
    %c0_i32 = arith.constant 0 : i32
    %c0_i32_0 = arith.constant 0 : i32
    %c0_i32_1 = arith.constant 0 : i32
    return %c0_i32, %c0_i32_0 : i32, i32
  }
  func.func @transform_3(%arg0: i32) -> (i32, i32) {
    %c0_i32 = arith.constant 0 : i32
    %c0_i32_0 = arith.constant 0 : i32
    %c0_i32_1 = arith.constant 0 : i32
    return %c0_i32, %c0_i32_0 : i32, i32
  }
  func.func @transform_4(%arg0: i32) -> (i32, i32) {
    %c0_i32 = arith.constant 0 : i32
    %c0_i32_0 = arith.constant 0 : i32
    return %arg0, %c0_i32 : i32, i32
  }
}

</mosaic_0001>

<bundles_post_ra>
// kernel: attention_lstm_forward.1
= control target key start
LH: loop header
LB: loop body
LE: loop exit
PB: predicated region body
PF: predicated region fallthrough
CT: control target
= control target key end

     0   :  { %s1180_s0 = inlined_call_operand.vmem [shape: f32[8,2,128], index: 0, kind: input, shape index: {}]   ;;  %s1181_s1 = inlined_call_operand.vmem [shape: f32[32,128], index: 1, kind: input, shape index: {}]   ;;  %s1182_s2 = inlined_call_operand.vmem [shape: f32[32,2], index: 2, kind: input, shape index: {}]   ;;  %s1183_s3 = inlined_call_operand.vmem [shape: f32[1,2], index: 3, kind: input, shape index: {}]   ;;  %s1184_s4 = inlined_call_operand.hbm [shape: f32[2,2], index: 4, kind: output, shape index: {}]  }
   0x1   :  { %v21_v0 = vld [vmem:[%s1181_s1 + $0x18] sm:$0xff]  ;;  %v20_v1 = vld [vmem:[%s1181_s1 + $0x10] sm:$0xff]  ;;  %v19_v2 = vld [vmem:[%s1181_s1 + $0x8] sm:$0xff] }
   0x2   :  { %39 = vmatpush.msra.mxu0 %v21_v0  ;;  %107 = vmatpush.msra.mxu1 %v21_v0 }
   0x3   :  { %175 = vmatpush.msra.mxu2 %v21_v0  ;;  %243 = vmatpush.msra.mxu3 %v21_v0 }
   0x4   :  { %9 = vsyncpa [#allocation4], 0  ;;  %40 = vmatpush.msra.mxu0 %v20_v1  ;;  %108 = vmatpush.msra.mxu1 %v20_v1  ;;  %v18_v3 = vld [vmem:[%s1181_s1] sm:$0xff]  ;;  %v998_v4 = vmov 0.0   ;;  %s999_s24 = smov 64   ;;  %s1000_s25 = smov 32  }
   0x5   :  { %176 = vmatpush.msra.mxu2 %v20_v1  ;;  %244 = vmatpush.msra.mxu3 %v20_v1  ;;  %v22_v5 = vld [vmem:[%s1180_s0] sm:$0x3]  ;;  %vm89_vm4 = vcmask 254976   ;;  %vm23_vm5 = vcmask 261120   ;;  %v870_v31 = vld [vmem:[%s1180_s0 + $0x2] sm:$0x3] }
   0x6   :  { %41 = vmatpush.msra.mxu0 %v19_v2  ;;  %109 = vmatpush.msra.mxu1 %v19_v2  ;;  %v873_v57 = vld [vmem:[%s1180_s0 + $0x4] sm:$0x3]  ;;  %s1001_s22 = smov [#allocation3]  }
   0x7   :  { %177 = vmatpush.msra.mxu2 %v19_v2  ;;  %245 = vmatpush.msra.mxu3 %v19_v2  ;;  %s858_s1 = sshll.u32 %s1001_s22, 4  ;;  %s859_s1 = int_to_ptr.vmem [resolvable:$true] %s858_s1 }
   0x8   :  { %42 = vmatpush.msra.mxu0 %v18_v3  ;;  %110 = vmatpush.msra.mxu1 %v18_v3 }
   0x9   :  { %43 = vmatmul.f32.vlgmr.msra.gmra.mxu0 %v998_v4  ;;  %178 = vmatpush.msra.mxu2 %v18_v3 }
   0xa   :  { %246 = vmatpush.msra.mxu3 %v18_v3  ;;  %311 = vmatpush.msrb.mxu0 %v21_v0 }
   0xb   :  { %379 = vmatpush.msrb.mxu1 %v21_v0  ;;  %447 = vmatpush.msrb.mxu2 %v21_v0 }
   0xc   :  { %312 = vmatpush.msrb.mxu0 %v20_v1  ;;  %515 = vmatpush.msrb.mxu3 %v21_v0 }
   0xd   :  { %380 = vmatpush.msrb.mxu1 %v20_v1  ;;  %448 = vmatpush.msrb.mxu2 %v20_v1 }
   0xe   :  { %313 = vmatpush.msrb.mxu0 %v19_v2  ;;  %516 = vmatpush.msrb.mxu3 %v20_v1 }
   0xf   :  { %381 = vmatpush.msrb.mxu1 %v19_v2  ;;  %449 = vmatpush.msrb.mxu2 %v19_v2 }
  0x10   :  { %314 = vmatpush.msrb.mxu0 %v18_v3  ;;  %517 = vmatpush.msrb.mxu3 %v19_v2 }
  0x11   :  { %382 = vmatpush.msrb.mxu1 %v18_v3  ;;  %450 = vmatpush.msrb.mxu2 %v18_v3 }
  0x12   :  { %518 = vmatpush.msrb.mxu3 %v18_v3 }
  0x86   :  { %v44_v6 = vpop.f32.mrf.mxu0 }
  0x87   :  { %v47_v7 = vadd.f32 %v44_v6, %v22_v5 }
  0x89   :  { %900 = vtanh.f32 %v47_v7  ;;  %v869_v9 = vmul.f32 -1.442695, %v47_v7 }
  0x8b   :  { %902 = vpow2.f32 %v869_v9 }
  0x8f   :  { %v901_v8 = vpop.eup %900 }
  0x90   :  { %70 = vrot.lane.b32.xlu0 %v901_v8, %s999_s24 }
  0x91   :  { %v903_v10 = vpop.eup %902 }
  0x92   :  { %v51_v11 = vadd.f32 1.0, %v903_v10 }
  0x94   :  { %904 = vrcp.f32 %v51_v11  ;;  %v63_v17 = vand.u32 2147483648, %v51_v11  ;;  %vm57_vm1 = vweird.f32 %v51_v11  ;;  %v61_v18 = vand.u32 2147483647, %v51_v11 }
  0x96   :  { %v64_v20 = vor.u32 1.1754944e-38, %v63_v17  ;;  %vm62_vm3 = vcmp.eq.f32.partialorder %v61_v18, 8.507059e+37 }
  0x9a   :  { %v905_v12 = vpop.eup %904 }
  0x9b   :  { %v53_v13 = vmul.f32 %v905_v12, %v51_v11  ;;  %vm58_vm0 = vweird.f32 %v905_v12 }
  0x9c   :  { %vm59_vm2 = vmor %vm57_vm1, %vm58_vm0 }
  0x9d   :  { %v54_v14 = vsub.f32 1.0, %v53_v13 }
  0x9f   :  { %v55_v15 = vmul.f32 %v905_v12, %v54_v14 }
  0xa1   :  { %v56_v16 = vadd.f32 %v905_v12, %v55_v15 }
  0xa3   :  { %v60_v19 = vsel %vm59_vm2, %v905_v12, %v56_v16 }
  0xa4   :  { %v65_v22 = vsel %vm62_vm3, %v64_v20, %v60_v19  ;;  %v876_v19 = vld [vmem:[%s1180_s0 + $0x6] sm:$0x3] }
  0xa5   :  { %v68_v24 = vmul.f32 0.0, %v65_v22 }
 0x102   :  { %v71_v21 = vpop.permute.xlu0 %70 }
 0x103   :  { %v73_v23 = vmul.f32 %v71_v21, %v65_v22 }
 0x105   :  { %75 = vrot.lane.b32.xlu0 %v73_v23, %s1000_s25 }
 0x177   :  { %v76_v25 = vpop.permute.xlu0 %75 }
 0x178   :  { %v78_v26 = vadd.f32 %v76_v25, %v68_v24 }
 0x17a   :  { %906 = vtanh.f32 %v78_v26 }
 0x180   :  { %v907_v27 = vpop.eup %906 }
 0x181   :  { %81 = vrot.lane.b32.xlu1 %v907_v27, %s999_s24 }
 0x1f3   :  { %v82_v28 = vpop.permute.xlu1 %81 }
 0x1f4   :  { %v84_v29 = vmul.f32 %v82_v28, %v65_v22 }
 0x1f6   :  { %86 = vrot.lane.b32.xlu1 %v84_v29, %s1000_s25 }
 0x268   :  { %v87_v30 = vpop.permute.xlu1 %86 }
 0x269   :  { %90 = vst.msk [vmem:[#allocation2] sm:$0x3] %vm89_vm4, %v87_v30  ;;  %871 = vmatmul.msk.f32.vlgmr.msra.gmra.mxu1 %vm23_vm5, %v87_v30 }
 0x2e6   :  { %v112_v32 = vpop.f32.mrf.mxu1 }
 0x2e7   :  { %v115_v33 = vadd.f32 %v870_v31, %v112_v32 }
 0x2e9   :  { %908 = vtanh.f32 %v115_v33  ;;  %v872_v35 = vmul.f32 -1.442695, %v115_v33 }
 0x2eb   :  { %910 = vpow2.f32 %v872_v35 }
 0x2ef   :  { %v909_v34 = vpop.eup %908 }
 0x2f0   :  { %138 = vrot.lane.b32.xlu2 %v909_v34, %s999_s24 }
 0x2f1   :  { %v911_v36 = vpop.eup %910 }
 0x2f2   :  { %v119_v37 = vadd.f32 1.0, %v911_v36 }
 0x2f4   :  { %912 = vrcp.f32 %v119_v37  ;;  %v131_v43 = vand.u32 2147483648, %v119_v37  ;;  %vm125_vm7 = vweird.f32 %v119_v37  ;;  %v129_v44 = vand.u32 2147483647, %v119_v37 }
 0x2f6   :  { %v132_v46 = vor.u32 1.1754944e-38, %v131_v43  ;;  %vm130_vm9 = vcmp.eq.f32.partialorder %v129_v44, 8.507059e+37 }
 0x2fa   :  { %v913_v38 = vpop.eup %912 }
 0x2fb   :  { %v121_v39 = vmul.f32 %v913_v38, %v119_v37  ;;  %vm126_vm6 = vweird.f32 %v913_v38 }
 0x2fc   :  { %vm127_vm8 = vmor %vm125_vm7, %vm126_vm6 }
 0x2fd   :  { %v122_v40 = vsub.f32 1.0, %v121_v39 }
 0x2ff   :  { %v123_v41 = vmul.f32 %v913_v38, %v122_v40 }
 0x301   :  { %v124_v42 = vadd.f32 %v913_v38, %v123_v41 }
 0x303   :  { %v128_v45 = vsel %vm127_vm8, %v913_v38, %v124_v42 }
 0x304   :  { %v133_v48 = vsel %vm130_vm9, %v132_v46, %v128_v45  ;;  %v879_v45 = vld [vmem:[%s1180_s0 + $0x8] sm:$0x3] }
 0x305   :  { %v136_v50 = vmul.f32 %v133_v48, %v78_v26 }
 0x34a   :  { %v139_v47 = vpop.permute.xlu2 %138 }
 0x34b   :  { %v141_v49 = vmul.f32 %v139_v47, %v133_v48 }
 0x34d   :  { %143 = vrot.lane.b32.xlu2 %v141_v49, %s1000_s25 }
 0x3a7   :  { %v144_v51 = vpop.permute.xlu2 %143 }
 0x3a8   :  { %v146_v52 = vadd.f32 %v144_v51, %v136_v50 }
 0x3aa   :  { %914 = vtanh.f32 %v146_v52 }
 0x3b0   :  { %v915_v53 = vpop.eup %914 }
 0x3b1   :  { %149 = vrot.lane.b32.xlu0 %v915_v53, %s999_s24 }
 0x423   :  { %v150_v54 = vpop.permute.xlu0 %149 }
 0x424   :  { %v152_v55 = vmul.f32 %v150_v54, %v133_v48 }
 0x426   :  { %154 = vrot.lane.b32.xlu1 %v152_v55, %s1000_s25 }
 0x498   :  { %v155_v56 = vpop.permute.xlu1 %154 }
 0x499   :  { %158 = vst.msk [vmem:[#allocation2 + $0x2] sm:$0x3] %vm89_vm4, %v155_v56  ;;  %874 = vmatmul.msk.f32.vlgmr.msra.gmra.mxu2 %vm23_vm5, %v155_v56 }
 0x51c   :  { %v180_v58 = vpop.f32.mrf.mxu2 }
 0x51d   :  { %v183_v59 = vadd.f32 %v873_v57, %v180_v58 }
 0x51f   :  { %916 = vtanh.f32 %v183_v59  ;;  %v875_v61 = vmul.f32 -1.442695, %v183_v59 }
 0x521   :  { %918 = vpow2.f32 %v875_v61 }
 0x525   :  { %v917_v60 = vpop.eup %916 }
 0x526   :  { %206 = vrot.lane.b32.xlu2 %v917_v60, %s999_s24 }
 0x527   :  { %v919_v62 = vpop.eup %918 }
 0x528   :  { %v187_v63 = vadd.f32 1.0, %v919_v62 }
 0x52a   :  { %920 = vrcp.f32 %v187_v63  ;;  %v199_v5 = vand.u32 2147483648, %v187_v63  ;;  %vm193_vm11 = vweird.f32 %v187_v63  ;;  %v197_v6 = vand.u32 2147483647, %v187_v63 }
 0x52c   :  { %v200_v8 = vor.u32 1.1754944e-38, %v199_v5  ;;  %vm198_vm13 = vcmp.eq.f32.partialorder %v197_v6, 8.507059e+37 }
 0x530   :  { %v921_v0 = vpop.eup %920 }
 0x531   :  { %v189_v1 = vmul.f32 %v921_v0, %v187_v63  ;;  %vm194_vm10 = vweird.f32 %v921_v0 }
 0x532   :  { %vm195_vm12 = vmor %vm193_vm11, %vm194_vm10 }
 0x533   :  { %v190_v2 = vsub.f32 1.0, %v189_v1 }
 0x535   :  { %v191_v3 = vmul.f32 %v921_v0, %v190_v2 }
 0x537   :  { %v192_v4 = vadd.f32 %v921_v0, %v191_v3 }
 0x539   :  { %v196_v7 = vsel %vm195_vm12, %v921_v0, %v192_v4 }
 0x53a   :  { %v201_v10 = vsel %vm198_vm13, %v200_v8, %v196_v7  ;;  %v882_v7 = vld [vmem:[%s1180_s0 + $0xa] sm:$0x3] }
 0x53b   :  { %v204_v12 = vmul.f32 %v201_v10, %v146_v52 }
 0x580   :  { %v207_v9 = vpop.permute.xlu2 %206 }
 0x581   :  { %v209_v11 = vmul.f32 %v207_v9, %v201_v10 }
 0x583   :  { %211 = vrot.lane.b32.xlu0 %v209_v11, %s1000_s25 }
 0x5f5   :  { %v212_v13 = vpop.permute.xlu0 %211 }
 0x5f6   :  { %v214_v14 = vadd.f32 %v212_v13, %v204_v12 }
 0x5f8   :  { %922 = vtanh.f32 %v214_v14 }
 0x5fe   :  { %v923_v15 = vpop.eup %922 }
 0x5ff   :  { %217 = vrot.lane.b32.xlu1 %v923_v15, %s999_s24 }
 0x671   :  { %v218_v16 = vpop.permute.xlu1 %217 }
 0x672   :  { %v220_v17 = vmul.f32 %v218_v16, %v201_v10 }
 0x674   :  { %222 = vrot.lane.b32.xlu2 %v220_v17, %s1000_s25 }
 0x6ce   :  { %v223_v18 = vpop.permute.xlu2 %222 }
 0x6cf   :  { %226 = vst.msk [vmem:[#allocation2 + $0x4] sm:$0x3] %vm89_vm4, %v223_v18  ;;  %877 = vmatmul.msk.f32.vlgmr.msra.gmra.mxu3 %vm23_vm5, %v223_v18 }
 0x752   :  { %v248_v20 = vpop.f32.mrf.mxu3 }
 0x753   :  { %v251_v21 = vadd.f32 %v876_v19, %v248_v20 }
 0x755   :  { %924 = vtanh.f32 %v251_v21  ;;  %v878_v23 = vmul.f32 -1.442695, %v251_v21 }
 0x757   :  { %926 = vpow2.f32 %v878_v23 }
 0x75b   :  { %v925_v22 = vpop.eup %924 }
 0x75c   :  { %274 = vrot.lane.b32.xlu0 %v925_v22, %s999_s24 }
 0x75d   :  { %v927_v24 = vpop.eup %926 }
 0x75e   :  { %v255_v25 = vadd.f32 1.0, %v927_v24 }
 0x760   :  { %928 = vrcp.f32 %v255_v25  ;;  %v267_v31 = vand.u32 2147483648, %v255_v25  ;;  %vm261_vm15 = vweird.f32 %v255_v25  ;;  %v265_v32 = vand.u32 2147483647, %v255_v25 }
 0x762   :  { %v268_v34 = vor.u32 1.1754944e-38, %v267_v31  ;;  %vm266_vm1 = vcmp.eq.f32.partialorder %v265_v32, 8.507059e+37 }
 0x766   :  { %v929_v26 = vpop.eup %928 }
 0x767   :  { %v257_v27 = vmul.f32 %v929_v26, %v255_v25  ;;  %vm262_vm14 = vweird.f32 %v929_v26 }
 0x768   :  { %vm263_vm0 = vmor %vm261_vm15, %vm262_vm14 }
 0x769   :  { %v258_v28 = vsub.f32 1.0, %v257_v27 }
 0x76b   :  { %v259_v29 = vmul.f32 %v929_v26, %v258_v28 }
 0x76d   :  { %v260_v30 = vadd.f32 %v929_v26, %v259_v29 }
 0x76f   :  { %v264_v33 = vsel %vm263_vm0, %v929_v26, %v260_v30 }
 0x770   :  { %v269_v36 = vsel %vm266_vm1, %v268_v34, %v264_v33  ;;  %v885_v33 = vld [vmem:[%s1180_s0 + $0xc] sm:$0x3] }
 0x771   :  { %v272_v38 = vmul.f32 %v269_v36, %v214_v14 }
 0x7ce   :  { %v275_v35 = vpop.permute.xlu0 %274 }
 0x7cf   :  { %v277_v37 = vmul.f32 %v275_v35, %v269_v36 }
 0x7d1   :  { %279 = vrot.lane.b32.xlu1 %v277_v37, %s1000_s25 }
 0x843   :  { %v280_v39 = vpop.permute.xlu1 %279 }
 0x844   :  { %v282_v40 = vadd.f32 %v280_v39, %v272_v38 }
 0x846   :  { %930 = vtanh.f32 %v282_v40 }
 0x84c   :  { %v931_v41 = vpop.eup %930 }
 0x84d   :  { %285 = vrot.lane.b32.xlu2 %v931_v41, %s999_s24 }
 0x8a7   :  { %v286_v42 = vpop.permute.xlu2 %285 }
 0x8a8   :  { %v288_v43 = vmul.f32 %v286_v42, %v269_v36 }
 0x8aa   :  { %290 = vrot.lane.b32.xlu0 %v288_v43, %s1000_s25 }
 0x91c   :  { %v291_v44 = vpop.permute.xlu0 %290 }
 0x91d   :  { %294 = vst.msk [vmem:[#allocation2 + $0x6] sm:$0x3] %vm89_vm4, %v291_v44  ;;  %880 = vmatmul.msk.f32.vlgmr.msrb.gmra.mxu0 %vm23_vm5, %v291_v44 }
 0x99a   :  { %v316_v46 = vpop.f32.mrf.mxu0 }
 0x99b   :  { %v319_v47 = vadd.f32 %v879_v45, %v316_v46 }
 0x99d   :  { %932 = vtanh.f32 %v319_v47  ;;  %v881_v49 = vmul.f32 -1.442695, %v319_v47 }
 0x99f   :  { %934 = vpow2.f32 %v881_v49 }
 0x9a3   :  { %v933_v48 = vpop.eup %932 }
 0x9a4   :  { %342 = vrot.lane.b32.xlu1 %v933_v48, %s999_s24 }
 0x9a5   :  { %v935_v50 = vpop.eup %934 }
 0x9a6   :  { %v323_v51 = vadd.f32 1.0, %v935_v50 }
 0x9a8   :  { %936 = vrcp.f32 %v323_v51  ;;  %v335_v57 = vand.u32 2147483648, %v323_v51  ;;  %vm329_vm3 = vweird.f32 %v323_v51  ;;  %v333_v58 = vand.u32 2147483647, %v323_v51 }
 0x9aa   :  { %v336_v60 = vor.u32 1.1754944e-38, %v335_v57  ;;  %vm334_vm7 = vcmp.eq.f32.partialorder %v333_v58, 8.507059e+37 }
 0x9ae   :  { %v937_v52 = vpop.eup %936 }
 0x9af   :  { %v325_v53 = vmul.f32 %v937_v52, %v323_v51  ;;  %vm330_vm2 = vweird.f32 %v937_v52 }
 0x9b0   :  { %vm331_vm6 = vmor %vm329_vm3, %vm330_vm2 }
 0x9b1   :  { %v326_v54 = vsub.f32 1.0, %v325_v53 }
 0x9b3   :  { %v327_v55 = vmul.f32 %v937_v52, %v326_v54 }
 0x9b5   :  { %v328_v56 = vadd.f32 %v937_v52, %v327_v55 }
 0x9b7   :  { %v332_v59 = vsel %vm331_vm6, %v937_v52, %v328_v56  ;;  %vm625_vm6 = vcmask 1041409  }
 0x9b8   :  { %v337_v62 = vsel %vm334_vm7, %v336_v60, %v332_v59  ;;  %v888_v59 = vld [vmem:[%s1180_s0 + $0xe] sm:$0x3]  ;;  %vm627_vm7 = vcmask 1042434  }
 0x9b9   :  { %v340_v0 = vmul.f32 %v337_v62, %v282_v40 }
 0xa16   :  { %v343_v61 = vpop.permute.xlu1 %342 }
 0xa17   :  { %v345_v63 = vmul.f32 %v343_v61, %v337_v62 }
 0xa19   :  { %347 = vrot.lane.b32.xlu2 %v345_v63, %s1000_s25 }
 0xa73   :  { %v348_v1 = vpop.permute.xlu2 %347 }
 0xa74   :  { %v350_v2 = vadd.f32 %v348_v1, %v340_v0 }
 0xa76   :  { %938 = vtanh.f32 %v350_v2 }
 0xa7c   :  { %v939_v3 = vpop.eup %938 }
 0xa7d   :  { %353 = vrot.lane.b32.xlu0 %v939_v3, %s999_s24 }
 0xaef   :  { %v354_v4 = vpop.permute.xlu0 %353 }
 0xaf0   :  { %v356_v5 = vmul.f32 %v354_v4, %v337_v62 }
 0xaf2   :  { %358 = vrot.lane.b32.xlu1 %v356_v5, %s1000_s25 }
 0xb64   :  { %v359_v6 = vpop.permute.xlu1 %358 }
 0xb65   :  { %362 = vst.msk [vmem:[#allocation2 + $0x8] sm:$0x3] %vm89_vm4, %v359_v6  ;;  %883 = vmatmul.msk.f32.vlgmr.msrb.gmra.mxu1 %vm23_vm5, %v359_v6 }
 0xbe2   :  { %v384_v8 = vpop.f32.mrf.mxu1 }
 0xbe3   :  { %v387_v9 = vadd.f32 %v882_v7, %v384_v8 }
 0xbe5   :  { %940 = vtanh.f32 %v387_v9  ;;  %v884_v11 = vmul.f32 -1.442695, %v387_v9 }
 0xbe7   :  { %942 = vpow2.f32 %v884_v11 }
 0xbeb   :  { %v941_v10 = vpop.eup %940 }
 0xbec   :  { %410 = vrot.lane.b32.xlu2 %v941_v10, %s999_s24 }
 0xbed   :  { %v943_v12 = vpop.eup %942 }
 0xbee   :  { %v391_v13 = vadd.f32 1.0, %v943_v12 }
 0xbf0   :  { %944 = vrcp.f32 %v391_v13  ;;  %v403_v19 = vand.u32 2147483648, %v391_v13  ;;  %vm397_vm9 = vweird.f32 %v391_v13  ;;  %v401_v20 = vand.u32 2147483647, %v391_v13 }
 0xbf2   :  { %v404_v22 = vor.u32 1.1754944e-38, %v403_v19  ;;  %vm402_vm11 = vcmp.eq.f32.partialorder %v401_v20, 8.507059e+37 }
 0xbf6   :  { %v945_v14 = vpop.eup %944 }
 0xbf7   :  { %v393_v15 = vmul.f32 %v945_v14, %v391_v13  ;;  %vm398_vm8 = vweird.f32 %v945_v14 }
 0xbf8   :  { %vm399_vm10 = vmor %vm397_vm9, %vm398_vm8  ;;  %vm629_vm8 = vcmask 1043459   ;;  %vm631_vm9 = vcmask 1044484  }
 0xbf9   :  { %v394_v16 = vsub.f32 1.0, %v393_v15 }
 0xbfb   :  { %v395_v17 = vmul.f32 %v945_v14, %v394_v16 }
 0xbfd   :  { %v396_v18 = vadd.f32 %v945_v14, %v395_v17 }
 0xbff   :  { %v400_v21 = vsel %vm399_vm10, %v945_v14, %v396_v18  ;;  %vm633_vm10 = vcmask 1045509  }
 0xc00   :  { %v405_v24 = vsel %vm402_vm11, %v404_v22, %v400_v21  ;;  %v1109_v21 = vld [vmem:[#allocation2 + $0x4] sm:$0x3]  ;;  %v1111_v22 = vld [vmem:[#allocation2 + $0x2] sm:$0x3]  ;;  %vm635_vm11 = vcmask 1046534  }
 0xc01   :  { %v408_v26 = vmul.f32 %v405_v24, %v350_v2 }
 0xc46   :  { %v411_v23 = vpop.permute.xlu2 %410 }
 0xc47   :  { %v413_v25 = vmul.f32 %v411_v23, %v405_v24  ;;  %v1113_v23 = vld [vmem:[#allocation2] sm:$0x3] }
 0xc49   :  { %415 = vrot.lane.b32.xlu0 %v413_v25, %s1000_s25 }
 0xcbb   :  { %v416_v27 = vpop.permute.xlu0 %415 }
 0xcbc   :  { %v418_v28 = vadd.f32 %v416_v27, %v408_v26 }
 0xcbe   :  { %946 = vtanh.f32 %v418_v28 }
 0xcc4   :  { %v947_v29 = vpop.eup %946 }
 0xcc5   :  { %421 = vrot.lane.b32.xlu1 %v947_v29, %s999_s24 }
 0xd37   :  { %v422_v30 = vpop.permute.xlu1 %421 }
 0xd38   :  { %v424_v31 = vmul.f32 %v422_v30, %v405_v24 }
 0xd3a   :  { %426 = vrot.lane.b32.xlu2 %v424_v31, %s1000_s25 }
 0xd94   :  { %v427_v32 = vpop.permute.xlu2 %426 }
 0xd95   :  { %430 = vst.msk [vmem:[#allocation2 + $0xa] sm:$0x3] %vm89_vm4, %v427_v32  ;;  %886 = vmatmul.msk.f32.vlgmr.msrb.gmra.mxu2 %vm23_vm5, %v427_v32 }
 0xd9c   :  { %v1124_v31 = vld [vmem:[#allocation2 + $0xa] sm:$0x3] }
 0xe18   :  { %v452_v34 = vpop.f32.mrf.mxu2 }
 0xe19   :  { %v455_v35 = vadd.f32 %v885_v33, %v452_v34  ;;  %v1128_v34 = vld [vmem:[#allocation2 + $0x6] sm:$0x3] }
 0xe1b   :  { %948 = vtanh.f32 %v455_v35  ;;  %v887_v37 = vmul.f32 -1.442695, %v455_v35 }
 0xe1d   :  { %950 = vpow2.f32 %v887_v37 }
 0xe21   :  { %v949_v36 = vpop.eup %948 }
 0xe22   :  { %478 = vrot.lane.b32.xlu0 %v949_v36, %s999_s24 }
 0xe23   :  { %v951_v38 = vpop.eup %950 }
 0xe24   :  { %v459_v39 = vadd.f32 1.0, %v951_v38 }
 0xe26   :  { %952 = vrcp.f32 %v459_v39  ;;  %v471_v45 = vand.u32 2147483648, %v459_v39  ;;  %vm465_vm13 = vweird.f32 %v459_v39  ;;  %v469_v46 = vand.u32 2147483647, %v459_v39 }
 0xe28   :  { %v472_v48 = vor.u32 1.1754944e-38, %v471_v45  ;;  %vm470_vm15 = vcmp.eq.f32.partialorder %v469_v46, 8.507059e+37  ;;  %v615_v46 = vlaneseq }
 0xe2c   :  { %v953_v40 = vpop.eup %952 }
 0xe2d   :  { %v461_v41 = vmul.f32 %v953_v40, %v459_v39  ;;  %vm466_vm12 = vweird.f32 %v953_v40  ;;  %v1134_v39 = vld [vmem:[#allocation2 + $0x8] sm:$0x3] }
 0xe2e   :  { %vm467_vm14 = vmor %vm465_vm13, %vm466_vm12  ;;  %vm637_vm12 = vcmask 1047559   ;;  %vm672_vm13 = vcmask 58368  }
 0xe2f   :  { %v462_v42 = vsub.f32 1.0, %v461_v41 }
 0xe31   :  { %v463_v43 = vmul.f32 %v953_v40, %v462_v42 }
 0xe33   :  { %v464_v44 = vadd.f32 %v953_v40, %v463_v43 }
 0xe35   :  { %v468_v47 = vsel %vm467_vm14, %v953_v40, %v464_v44 }
 0xe36   :  { %v473_v50 = vsel %vm470_vm15, %v472_v48, %v468_v47  ;;  %v616_v47 = vand.u32 127, %v615_v46 }
 0xe37   :  { %v476_v52 = vmul.f32 %v473_v50, %v418_v28 }
 0xe94   :  { %v479_v49 = vpop.permute.xlu0 %478 }
 0xe95   :  { %v481_v51 = vmul.f32 %v479_v49, %v473_v50 }
 0xe97   :  { %483 = vrot.lane.b32.xlu1 %v481_v51, %s1000_s25 }
 0xf09   :  { %v484_v53 = vpop.permute.xlu1 %483 }
 0xf0a   :  { %v486_v54 = vadd.f32 %v484_v53, %v476_v52 }
 0xf0c   :  { %954 = vtanh.f32 %v486_v54 }
 0xf12   :  { %v955_v55 = vpop.eup %954 }
 0xf13   :  { %489 = vrot.lane.b32.xlu2 %v955_v55, %s999_s24 }
 0xf6d   :  { %v490_v56 = vpop.permute.xlu2 %489 }
 0xf6e   :  { %v492_v57 = vmul.f32 %v490_v56, %v473_v50 }
 0xf70   :  { %494 = vrot.lane.b32.xlu0 %v492_v57, %s1000_s25 }
 0xfe2   :  { %v495_v58 = vpop.permute.xlu0 %494 }
 0xfe3   :  { %498 = vst.msk [vmem:[#allocation2 + $0xc] sm:$0x3] %vm89_vm4, %v495_v58  ;;  %889 = vmatmul.msk.f32.vlgmr.msrb.gmra.mxu3 %vm23_vm5, %v495_v58 }
 0xfea   :  { %v1122_v30 = vld [vmem:[#allocation2 + $0xc] sm:$0x3] }
0x1066   :  { %v520_v60 = vpop.f32.mrf.mxu3 }
0x1067   :  { %v523_v61 = vadd.f32 %v888_v59, %v520_v60 }
0x1069   :  { %956 = vtanh.f32 %v523_v61  ;;  %v890_v63 = vmul.f32 -1.442695, %v523_v61 }
0x106b   :  { %958 = vpow2.f32 %v890_v63 }
0x106f   :  { %v957_v62 = vpop.eup %956 }
0x1070   :  { %546 = vrot.lane.b32.xlu1 %v957_v62, %s999_s24 }
0x1071   :  { %v959_v0 = vpop.eup %958 }
0x1072   :  { %v527_v1 = vadd.f32 1.0, %v959_v0 }
0x1074   :  { %960 = vrcp.f32 %v527_v1  ;;  %v539_v7 = vand.u32 2147483648, %v527_v1  ;;  %vm533_vm1 = vweird.f32 %v527_v1  ;;  %v537_v8 = vand.u32 2147483647, %v527_v1 }
0x1076   :  { %v540_v10 = vor.u32 1.1754944e-38, %v539_v7  ;;  %vm538_vm3 = vcmp.eq.f32.partialorder %v537_v8, 8.507059e+37 }
0x107a   :  { %v961_v2 = vpop.eup %960 }
0x107b   :  { %v529_v3 = vmul.f32 %v961_v2, %v527_v1  ;;  %vm534_vm0 = vweird.f32 %v961_v2 }
0x107c   :  { %vm535_vm2 = vmor %vm533_vm1, %vm534_vm0 }
0x107d   :  { %v530_v4 = vsub.f32 1.0, %v529_v3 }
0x107f   :  { %v531_v5 = vmul.f32 %v961_v2, %v530_v4 }
0x1081   :  { %v532_v6 = vadd.f32 %v961_v2, %v531_v5 }
0x1083   :  { %v536_v9 = vsel %vm535_vm2, %v961_v2, %v532_v6  ;;  %vm839_vm2 = vcmask 9216  }
0x1084   :  { %v541_v12 = vsel %vm538_vm3, %v540_v10, %v536_v9 }
0x1085   :  { %v544_v14 = vmul.f32 %v541_v12, %v486_v54 }
0x10e2   :  { %v547_v11 = vpop.permute.xlu1 %546 }
0x10e3   :  { %v549_v13 = vmul.f32 %v547_v11, %v541_v12 }
0x10e5   :  { %551 = vrot.lane.b32.xlu2 %v549_v13, %s1000_s25  ;;  %v731_v13 = vshrl.u32 %v615_v46, 7 }
0x10e7   :  { %896 = vset.pattern.permute.xlu2 %v731_v13 }
0x113f   :  { %v552_v15 = vpop.permute.xlu2 %551 }
0x1140   :  { %v554_v16 = vadd.f32 %v552_v15, %v544_v14 }
0x1142   :  { %962 = vtanh.f32 %v554_v16 }
0x1148   :  { %v963_v17 = vpop.eup %962 }
0x1149   :  { %557 = vrot.lane.b32.xlu0 %v963_v17, %s999_s24  ;;  %s860_s24 = sshll.u32 %s1184_s4, 4  ;;  %s861_s24 = int_to_ptr.hbm [resolvable:$true] %s860_s24 }
0x11bb   :  { %v558_v18 = vpop.permute.xlu0 %557 }
0x11bc   :  { %v560_v19 = vmul.f32 %v558_v18, %v541_v12 }
0x11be   :  { %562 = vrot.lane.b32.xlu1 %v560_v19, %s1000_s25 }
0x1230   :  { %v563_v20 = vpop.permute.xlu1 %562 }
0x1231   :  { %566 = vst.msk [vmem:[#allocation2 + $0xe] sm:$0x3] %vm89_vm4, %v563_v20  ;;  %v577_v24 = vmul.f32 %v1109_v21, %v563_v20  ;;  %v576_v25 = vmul.f32 %v1111_v22, %v563_v20  ;;  %v575_v26 = vmul.f32 %v1113_v23, %v563_v20  ;;  %v581_v32 = vmul.f32 %v1122_v30, %v563_v20 }
0x1232   :  { %v580_v33 = vmul.f32 %v1124_v31, %v563_v20  ;;  %v578_v35 = vmul.f32 %v1128_v34, %v563_v20  ;;  %v579_v40 = vmul.f32 %v1134_v39, %v563_v20 }
0x1233   :  { %v589_v27 = vsel %vm89_vm4, %v577_v24, 0.0  ;;  %v586_v28 = vsel %vm89_vm4, %v576_v25, 0.0  ;;  %v583_v29 = vsel %vm89_vm4, %v575_v26, 0.0  ;;  %v601_v36 = vsel %vm89_vm4, %v581_v32, 0.0 }
0x1234   :  { %590 = vadd.xlane.f32.xlu1 %v589_v27  ;;  %587 = vadd.xlane.f32.xlu0 %v586_v28  ;;  %v598_v37 = vsel %vm89_vm4, %v580_v33, 0.0  ;;  %v592_v38 = vsel %vm89_vm4, %v578_v35, 0.0  ;;  %v595_v41 = vsel %vm89_vm4, %v579_v40, 0.0 }
0x1235   :  { %584 = vadd.xlane.f32.xlu2 %v583_v29 }
0x1238   :  { %v1138_v42 = vld [vmem:[#allocation2 + $0xe] sm:$0x3] }
0x1239   :  { %v582_v43 = vmul.f32 %v1138_v42, %v563_v20 }
0x123b   :  { %v604_v44 = vsel %vm89_vm4, %v582_v43, 0.0 }
0x123c   :  { %602 = vadd.xlane.f32.xlu1 %v601_v36  ;;  %599 = vadd.xlane.f32.xlu0 %v598_v37 }
0x123d   :  { %593 = vadd.xlane.f32.xlu2 %v592_v38 }
0x1245   :  { %596 = vadd.xlane.f32.xlu2 %v595_v41 }
0x124d   :  { %605 = vadd.xlane.f32.xlu2 %v604_v44  ;;  %v811_v44 = vld [vmem:[%s1182_s2 + $0x18] sm:$0xff] }
0x124e   :  { %831 = vmatpush.msra.mxu0 %v811_v44 }
0x12a7   :  { %v588_v48 = vpop.xlane.xlu0 %587  ;;  %v591_v50 = vpop.xlane.xlu1 %590 }
0x12a8   :  { %v585_v45 = vpop.xlane.xlu2 %584  ;;  %v618_v51 = vperm.slane %v588_v48, %v616_v47  ;;  %v619_v53 = vperm.slane %v591_v50, %v616_v47  ;;  %v808_v48 = vld [vmem:[%s1182_s2] sm:$0xff] }
0x12a9   :  { %v617_v52 = vperm.slane %v585_v45, %v616_v47  ;;  %v810_v45 = vld [vmem:[%s1182_s2 + $0x10] sm:$0xff] }
0x12aa   :  { %832 = vmatpush.msra.mxu0 %v810_v45 }
0x12ab   :  { %v626_v54 = vsel %vm625_vm6, %v618_v51, %v617_v52 }
0x12ac   :  { %v628_v59 = vsel %vm627_vm7, %v619_v53, %v626_v54 }
0x12af   :  { %v600_v58 = vpop.xlane.xlu0 %599  ;;  %v603_v62 = vpop.xlane.xlu1 %602 }
0x12b0   :  { %v594_v49 = vpop.xlane.xlu2 %593  ;;  %v622_v63 = vperm.slane %v600_v58, %v616_v47  ;;  %v623_v1 = vperm.slane %v603_v62, %v616_v47 }
0x12b1   :  { %v620_v55 = vperm.slane %v594_v49, %v616_v47 }
0x12b3   :  { %v630_v60 = vsel %vm629_vm8, %v620_v55, %v628_v59 }
0x12b8   :  { %v597_v56 = vpop.xlane.xlu2 %596 }
0x12b9   :  { %v621_v57 = vperm.slane %v597_v56, %v616_v47 }
0x12bb   :  { %v632_v61 = vsel %vm631_vm9, %v621_v57, %v630_v60 }
0x12bc   :  { %v634_v0 = vsel %vm633_vm10, %v622_v63, %v632_v61 }
0x12bd   :  { %v636_v4 = vsel %vm635_vm11, %v623_v1, %v634_v0 }
0x12c0   :  { %v606_v2 = vpop.xlane.xlu2 %605 }
0x12c1   :  { %v624_v3 = vperm.slane %v606_v2, %v616_v47  ;;  %v809_v47 = vld [vmem:[%s1182_s2 + $0x8] sm:$0xff] }
0x12c2   :  { %833 = vmatpush.msra.mxu0 %v809_v47 }
0x12c3   :  { %v638_v5 = vsel %vm637_vm12, %v624_v3, %v636_v4 }
0x12c4   :  { %640 = vxpose.xlu0.b32.start.end [1/1] (short) (narrow) %v638_v5, 8  ;;  %834 = vmatpush.msra.mxu0 %v808_v48 }
0x132b   :  { %897 = vset.pattern.permute.xlu0 %v731_v13 }
0x1368   :  { %v656_v6 = vpop.trf.xlu0 }
0x1369   :  { %v673_v7 = vsel %vm672_vm13, %v656_v6, -inf }
0x136a   :  { %674 = vmax.xlane.f32.xlu1 %v673_v7 }
0x13dd   :  { %v675_v8 = vpop.xlane.xlu1 %674 }
0x13de   :  { %v676_v9 = vsub.f32 %v656_v6, %v675_v8 }
0x13e0   :  { %v677_v10 = vmul.f32 1.442695, %v676_v9 }
0x13e2   :  { %964 = vpow2.f32 %v677_v10 }
0x13e8   :  { %v965_v11 = vpop.eup %964 }
0x13e9   :  { %v679_v12 = vsel %vm672_vm13, %v965_v11, 0.0 }
0x13ea   :  { %680 = vadd.xlane.f32.xlu2 %v679_v12 }
0x145d   :  { %v681_v14 = vpop.xlane.xlu2 %680 }
0x145e   :  { %966 = vrcp.f32 %v681_v14  ;;  %v693_v18 = vand.u32 2147483648, %v681_v14  ;;  %v691_v20 = vand.u32 2147483647, %v681_v14  ;;  %vm687_vm15 = vweird.f32 %v681_v14 }
0x1460   :  { %v694_v25 = vor.u32 1.1754944e-38, %v693_v18  ;;  %vm692_vm1 = vcmp.eq.f32.partialorder %v691_v20, 8.507059e+37 }
0x1464   :  { %v967_v15 = vpop.eup %966 }
0x1465   :  { %v683_v16 = vmul.f32 %v967_v15, %v681_v14  ;;  %vm688_vm14 = vweird.f32 %v967_v15 }
0x1466   :  { %vm689_vm0 = vmor %vm687_vm15, %vm688_vm14 }
0x1467   :  { %v684_v17 = vsub.f32 1.0, %v683_v16 }
0x1469   :  { %v685_v19 = vmul.f32 %v967_v15, %v684_v17 }
0x146b   :  { %v686_v24 = vadd.f32 %v967_v15, %v685_v19 }
0x146d   :  { %v690_v26 = vsel %vm689_vm0, %v967_v15, %v686_v24 }
0x146e   :  { %v695_v27 = vsel %vm692_vm1, %v694_v25, %v690_v26 }
0x146f   :  { %v696_v28 = vmul.f32 %v965_v11, %v695_v27 }
0x1471   :  { %697 = vxpose.xlu1.b32.start.end [1/1] (short) (narrow) %v696_v28, 8 }
0x14c4   :  { %898 = vset.pattern.permute.xlu1 %v731_v13 }
0x1515   :  { %v713_v29 = vpop.trf.xlu1 }
0x1516   :  { %v771_v32 = vperm.slane %v713_v29, 6  ;;  %v743_v33 = vperm.slane %v713_v29, 2  ;;  %v729_v35 = vperm.slane %v713_v29, 0  ;;  %v736_v36 = vperm.slane %v713_v29, 1 }
0x1517   :  { %v750_v37 = vperm.slane %v713_v29, 3  ;;  %v757_v38 = vperm.slane %v713_v29, 4  ;;  %v764_v40 = vperm.slane %v713_v29, 5  ;;  %v778_v41 = vperm.slane %v713_v29, 7 }
0x1518   :  { %776 = vperm.xlu1 %898, %v771_v32   ;;  %748 = vperm.xlu0 %897, %v743_v33  }
0x1519   :  { %734 = vperm.xlu2 %896, %v729_v35  }
0x1521   :  { %741 = vperm.xlu2 %896, %v736_v36  }
0x1529   :  { %755 = vperm.xlu2 %896, %v750_v37  }
0x1531   :  { %762 = vperm.xlu2 %896, %v757_v38  }
0x1539   :  { %769 = vperm.xlu2 %896, %v764_v40  }
0x1541   :  { %783 = vperm.xlu2 %896, %v778_v41  }
0x1573   :  { %v735_v43 = vpop.permute.xlu2 %734 }
0x1574   :  { %v785_v51 = vmul.f32 %v735_v43, %v1113_v23 }
0x1576   :  { %v793_v56 = vsel %vm89_vm4, %v785_v51, 0.0 }
0x157b   :  { %v742_v46 = vpop.permute.xlu2 %741 }
0x157c   :  { %v786_v50 = vmul.f32 %v742_v46, %v1111_v22 }
0x157e   :  { %v794_v52 = vsel %vm89_vm4, %v786_v50, 0.0 }
0x157f   :  { %v795_v57 = vadd.f32 %v794_v52, %v793_v56 }
0x1583   :  { %v756_v49 = vpop.permute.xlu2 %755 }
0x1584   :  { %v788_v59 = vmul.f32 %v756_v49, %v1128_v34 }
0x1586   :  { %v798_v61 = vsel %vm89_vm4, %v788_v59, 0.0 }
0x158a   :  { %v749_v53 = vpop.permute.xlu0 %748  ;;  %v777_v0 = vpop.permute.xlu1 %776 }
0x158b   :  { %v787_v54 = vmul.f32 %v749_v53, %v1109_v21  ;;  %v763_v55 = vpop.permute.xlu2 %762  ;;  %v791_v3 = vmul.f32 %v777_v0, %v1122_v30 }
0x158c   :  { %v789_v22 = vmul.f32 %v763_v55, %v1134_v39 }
0x158d   :  { %v796_v58 = vsel %vm89_vm4, %v787_v54, 0.0  ;;  %v804_v34 = vsel %vm89_vm4, %v791_v3, 0.0 }
0x158e   :  { %v797_v60 = vadd.f32 %v796_v58, %v795_v57  ;;  %v800_v21 = vsel %vm89_vm4, %v789_v22, 0.0 }
0x1590   :  { %v799_v62 = vadd.f32 %v798_v61, %v797_v60 }
0x1592   :  { %v801_v2 = vadd.f32 %v800_v21, %v799_v62 }
0x1593   :  { %v770_v23 = vpop.permute.xlu2 %769 }
0x1594   :  { %v790_v63 = vmul.f32 %v770_v23, %v1124_v31  ;;  %v899_v31 = vld [vmem:[%s1183_s3] ss:$0 sm:$0xff] }
0x1596   :  { %v802_v1 = vsel %vm89_vm4, %v790_v63, 0.0 }
0x1597   :  { %v803_v4 = vadd.f32 %v802_v1, %v801_v2 }
0x1599   :  { %v805_v7 = vadd.f32 %v804_v34, %v803_v4 }
0x159b   :  { %v784_v5 = vpop.permute.xlu2 %783 }
0x159c   :  { %v792_v6 = vmul.f32 %v784_v5, %v1138_v42 }
0x159e   :  { %v806_v39 = vsel %vm89_vm4, %v792_v6, 0.0 }
0x159f   :  { %v807_v8 = vadd.f32 %v806_v39, %v805_v7 }
0x15a1   :  { %891 = vmatmul.msk.f32.vlgmr.msra.gmra.mxu0 %vm23_vm5, %v807_v8 }
0x161e   :  { %v836_v9 = vpop.f32.mrf.mxu0 }
0x161f   :  { %v837_v10 = vadd.f32 %v899_v31, %v836_v9 }
0x1621   :  { %v840_v30 = vsel %vm839_vm2, %v837_v10, -inf }
0x1622   :  { %841 = vmax.xlane.f32.xlu2 %v840_v30 }
0x1695   :  { %v842_v11 = vpop.xlane.xlu2 %841 }
0x1696   :  { %v843_v12 = vsub.f32 %v837_v10, %v842_v11 }
0x1698   :  { %v844_v13 = vmul.f32 1.442695, %v843_v12 }
0x169a   :  { %968 = vpow2.f32 %v844_v13 }
0x16a0   :  { %v969_v42 = vpop.eup %968 }
0x16a1   :  { %v846_v14 = vsel %vm839_vm2, %v969_v42, 0.0 }
0x16a2   :  { %847 = vadd.xlane.f32.xlu2 %v846_v14 }
0x1715   :  { %v848_v15 = vpop.xlane.xlu2 %847 }
0x1716   :  { %970 = vlog2.f32 %v848_v15 }
0x171c   :  { %v971_v16 = vpop.eup %970 }
0x171d   :  { %v850_v17 = vmul.f32 0.6931472, %v971_v16 }
0x171f   :  { %v851_v18 = vsub.f32 %v843_v12, %v850_v17 }
0x1721   :  { %852 = vst.msk [vmem:[#allocation3] sm:$0x3] %vm839_vm2, %v851_v18 }
0x1722   :  { %863 = dma.vmem_to_hbm [thread:$0]  %s859_s1, 32, %s861_s24, [#allocation4]  }
0x1723   :  { %996 = dma.done.wait [#allocation4], 32  }
0x1724   :  { %997 = vsyncadd [#allocation4], 4294967264 }
0x1725   :  { %868 = vsyncpa [#allocation4], 1 }

</bundles_post_ra>
